<compile_context>
chip_gen: v5e
topology: v5e:2x2
jax: 0.10.0
libtpu: 0.0.40
codegen_flags: <defaults>
</compile_context>

<pallas_src>
import functools

import numpy as np
import jax
import jax.numpy as jnp
from jax.experimental import pallas as pl
from jax.experimental.pallas import tpu as pltpu


def _n_iters(n: int) -> int:
    return int(round(np.log2(n)))


def _crossover_stage(n: int) -> int:
    """Stage index where the kernel switches from the transposed layout
    (lanes = rows) to the normal layout (lanes = cols)."""
    n_iters = _n_iters(n)
    if n_iters < 8:               # tiny signals: single normal-layout phase
        return 0
    lo, hi = 3, n_iters - 7       # crossover shape (2^lo, n/2^lo) >= (8, 128)
    if hi < lo:                   # 256 <= N < 1024: just balance the phases
        return n_iters // 2
    return min(max(n_iters // 2, lo), hi)


def _make_fft_kernel(n: int, it_c: int):
    """Butterfly kernel for a fixed (static) signal length n, crossover it_c."""
    n_iters = _n_iters(n)

    def kernel(*refs):
        if it_c > 0:
            x_ref, w_col_ref, w_row_ref, out_ref = refs
        else:
            x_ref, w_row_ref, out_ref = refs
            w_col_ref = None

        # ---- Phase A: transposed layout.  State T has shape (M, D) with
        # T[m, d] == x_torch[d, m]; lanes = D (large in the early stages). ----
        if it_c > 0:
            tr = x_ref[...]                 # (1, N) real part (lane-major)
            ti = None                       # imaginary part is exactly zero
            for it in range(it_c):
                m = 1 << it
                h = (n >> it) // 2          # = D/2, lane width of each half
                wr = w_col_ref[0:m, 2 * it:2 * it + 1]      # (m, 1)
                wi = w_col_ref[0:m, 2 * it + 1:2 * it + 2]  # (m, 1)
                top_r, bot_r = tr[:, :h], tr[:, h:]
                if ti is None:              # first stage: imag == 0
                    pr = bot_r * wr
                    pi = bot_r * wi
                    o1r, o2r = top_r + pr, top_r - pr
                    o1i, o2i = pi, -pi
                else:
                    top_i, bot_i = ti[:, :h], ti[:, h:]
                    pr = bot_r * wr - bot_i * wi
                    pi = bot_r * wi + bot_i * wr
                    o1r, o2r = top_r + pr, top_r - pr
                    o1i, o2i = top_i + pi, top_i - pi
                # sublane concat; lane width h stays a multiple of 128 here
                tr = jnp.concatenate([o1r, o2r], axis=0)    # (2m, h)
                ti = jnp.concatenate([o1i, o2i], axis=0)
            # Single crossover transpose (2^it_c, n/2^it_c) -> normal layout.
            xr = jnp.transpose(tr)
            xi = jnp.transpose(ti)
        else:
            xr = x_ref[...]                 # (N, 1)
            xi = None

        # ---- Phase B: normal layout.  State x has shape (D, M); lanes = M
        # (large in the late stages). ----
        for it in range(it_c, n_iters):
            m = 1 << it
            h = (n >> it) // 2
            wr = w_row_ref[0:1, m - 1:2 * m - 1]            # (1, m)
            wi = w_row_ref[1:2, m - 1:2 * m - 1]            # (1, m)
            top_r, bot_r = xr[:h, :], xr[h:, :]
            if xi is None:                  # first stage: imag == 0
                pr = bot_r * wr
                pi = bot_r * wi
                o1r, o2r = top_r + pr, top_r - pr
                o1i, o2i = pi, -pi
            else:
                top_i, bot_i = xi[:h, :], xi[h:, :]
                pr = bot_r * wr - bot_i * wi
                pi = bot_r * wi + bot_i * wr
                o1r, o2r = top_r + pr, top_r - pr
                o1i, o2i = top_i + pi, top_i - pi
            # lane concat; m is a multiple of 128 for the big late stages
            xr = jnp.concatenate([o1r, o2r], axis=1)        # (h, 2m)
            xi = jnp.concatenate([o1i, o2i], axis=1)

        # Two full-width, lane-dense row stores: row 0 real, row 1 imag.
        out_ref[0:1, :] = xr                                # (1, N)
        out_ref[1:2, :] = xi                                # (1, N)

    return kernel


def init_weight(n: int) -> jax.Array:
    """Deterministic parameter init, identical to FFTModel.__init__."""
    base = np.linspace(0, -3.1415, n // 2 + 1)
    cos_p = np.cos(base)[: n // 2]
    sin_p = np.sin(base)[: n // 2]
    return jnp.asarray(np.stack([cos_p, sin_p], axis=1), dtype=jnp.float32)


def _pack_twiddles(weight: jax.Array, n: int, it_c: int):
    """Parameter glue (outside the kernel): gather the per-stage strided views
    weight[0::delim] into packed, DMA-friendly buffers."""
    wr_parts, wi_parts = [], []
    delim = n // 2
    while delim != 0:
        w_ = weight[0::delim]                        # (M, 2) for this stage
        wr_parts.append(w_[:, 0])
        wi_parts.append(w_[:, 1])
        delim //= 2
    wr_flat = jnp.concatenate(wr_parts)              # (n - 1,)
    wi_flat = jnp.concatenate(wi_parts)
    pad = n - wr_flat.shape[0]
    w_row = jnp.stack([jnp.pad(wr_flat, (0, pad)),
                       jnp.pad(wi_flat, (0, pad))], axis=0)   # (2, n) lane-dense

    w_col = None
    if it_c > 0:                                      # column-packed, phase A
        m_max = 1 << (it_c - 1)
        cols = []
        for it in range(it_c):
            m = 1 << it
            w_ = weight[0::(n >> (it + 1))]           # (m, 2)
            cols.append(jnp.pad(w_[:, 0], (0, m_max - m)))
            cols.append(jnp.pad(w_[:, 1], (0, m_max - m)))
        w_col = jnp.stack(cols, axis=1)               # (m_max, 2 * it_c)
    return w_col, w_row


@jax.jit
def fft_model_forward(signal: jax.Array, weight: jax.Array) -> jax.Array:
    """Pallas equivalent of FFTModel.forward.  signal: (N,), weight: (N//2, 2).
    Returns (1, N, 2) like the PyTorch module."""
    n = signal.shape[0]
    if n < 2 or (n & (n - 1)) != 0:
        raise Exception("Signal length must be power of 2")
    it_c = _crossover_stage(n)

    signal = signal.astype(jnp.float32)
    weight = weight.astype(jnp.float32)
    w_col, w_row = _pack_twiddles(weight, n, it_c)

    if it_c > 0:
        x2d = signal.reshape(1, n)        # lane-major initial state (phase A)
        args = (x2d, w_col, w_row)
    else:
        x2d = signal.reshape(n, 1)        # tiny-N single-phase layout
        args = (x2d, w_row)

    vmem = pl.BlockSpec(memory_space=pltpu.MemorySpace.VMEM)
    # working set ~ input + packed twiddles + live real/imag state + output
    vmem_limit = int(min(96 * 1024 * 1024, max(4 * 1024 * 1024, 64 * n)))

    out = pl.pallas_call(
        _make_fft_kernel(n, it_c),
        out_shape=jax.ShapeDtypeStruct((2, n), jnp.float32),
        in_specs=[vmem] * len(args),
        out_specs=vmem,
        compiler_params=pltpu.CompilerParams(vmem_limit_bytes=vmem_limit),
    )(*args)

    # (2, N) lane-dense kernel output -> (1, N, 2) to match PyTorch layout.
    return jnp.transpose(out)[None, :, :]


def fft_model_ref(signal: jax.Array, weight: jax.Array) -> jax.Array:
    """Pure-JAX mirror of the PyTorch forward pass (for correctness check)."""
    n = signal.shape[0]
    x = jnp.stack([signal, jnp.zeros_like(signal)], axis=1).reshape(n, 1, 2)
    delim = n // 2
    while delim != 0:
        w_ = weight[0::delim]
        in1 = x[delim:]
        re = in1[:, :, 0] * w_[:, 0] - in1[:, :, 1] * w_[:, 1]
        im = in1[:, :, 0] * w_[:, 1] + in1[:, :, 1] * w_[:, 0]
        prod = jnp.stack([re, im], axis=-1)
        x = jnp.concatenate([x[:delim] + prod, x[:delim] - prod], axis=1)
        delim //= 2
    return x


if __name__ == "__main__":
    key = jax.random.PRNGKey(0)
    # Two sizes: N=16 exercises the tiny single-phase path, N=1024 exercises
    # the lane-dense two-phase path with the (8,128)-aligned crossover.
    for n in (16, 1024):
        signal = jax.random.normal(key, (n,), dtype=jnp.float32)
        weight = init_weight(n)

        out = jax.block_until_ready(fft_model_forward(signal, weight))
        ref = fft_model_ref(signal, weight)

        assert out.shape == (1, n, 2), out.shape
        np.testing.assert_allclose(np.asarray(out), np.asarray(ref),
                                   rtol=1e-4, atol=1e-3)
    print("KERNEL_OK")
</pallas_src>

<mosaic_0001>
module attributes {stable_mosaic.version = 11 : i64} {
  func.func @kernel(%arg0: memref<16x1xf32, #tpu.memory_space<vmem>>, %arg1: memref<2x16xf32, #tpu.memory_space<vmem>>, %arg2: memref<2x16xf32, #tpu.memory_space<vmem>>) attributes {dimension_semantics = [], scalar_prefetch = 0 : i64, scratch_operands = 0 : i64, tpu.core_type = #tpu.core_type<tc>} {
    %c0 = arith.constant 0 : index
    %c0_0 = arith.constant 0 : index
    %0 = vector.load %arg0[%c0, %c0_0] : memref<16x1xf32, #tpu.memory_space<vmem>>, vector<16x1xf32>
    %c0_1 = arith.constant 0 : index
    %c0_2 = arith.constant 0 : index
    %1 = vector.load %arg1[%c0_1, %c0_2] : memref<2x16xf32, #tpu.memory_space<vmem>>, vector<1x1xf32>
    %c1 = arith.constant 1 : index
    %c0_3 = arith.constant 0 : index
    %2 = vector.load %arg1[%c1, %c0_3] : memref<2x16xf32, #tpu.memory_space<vmem>>, vector<1x1xf32>
    %3 = vector.extract_strided_slice %0 {offsets = [0, 0], sizes = [8, 1], strides = [1, 1]} : vector<16x1xf32> to vector<8x1xf32>
    %4 = vector.extract_strided_slice %0 {offsets = [8, 0], sizes = [8, 1], strides = [1, 1]} : vector<16x1xf32> to vector<8x1xf32>
    %5 = vector.broadcast %1 : vector<1x1xf32> to vector<8x1xf32>
    %6 = arith.mulf %4, %5 : vector<8x1xf32>
    %7 = vector.broadcast %2 : vector<1x1xf32> to vector<8x1xf32>
    %8 = arith.mulf %4, %7 : vector<8x1xf32>
    %9 = arith.addf %3, %6 : vector<8x1xf32>
    %10 = arith.subf %3, %6 : vector<8x1xf32>
    %cst = arith.constant 0.000000e+00 : f32
    %11 = vector.broadcast %cst : f32 to vector<8x1xf32>
    %12 = arith.subf %11, %8 : vector<8x1xf32>
    %13 = tpu.concatenate %9, %10 in 1 : vector<8x1xf32>, vector<8x1xf32> -> vector<8x2xf32>
    %14 = tpu.concatenate %8, %12 in 1 : vector<8x1xf32>, vector<8x1xf32> -> vector<8x2xf32>
    %c0_4 = arith.constant 0 : index
    %c1_5 = arith.constant 1 : index
    %15 = vector.load %arg1[%c0_4, %c1_5] : memref<2x16xf32, #tpu.memory_space<vmem>>, vector<1x2xf32>
    %c1_6 = arith.constant 1 : index
    %c1_7 = arith.constant 1 : index
    %16 = vector.load %arg1[%c1_6, %c1_7] : memref<2x16xf32, #tpu.memory_space<vmem>>, vector<1x2xf32>
    %17 = vector.extract_strided_slice %13 {offsets = [0, 0], sizes = [4, 2], strides = [1, 1]} : vector<8x2xf32> to vector<4x2xf32>
    %18 = vector.extract_strided_slice %13 {offsets = [4, 0], sizes = [4, 2], strides = [1, 1]} : vector<8x2xf32> to vector<4x2xf32>
    %19 = vector.extract_strided_slice %14 {offsets = [0, 0], sizes = [4, 2], strides = [1, 1]} : vector<8x2xf32> to vector<4x2xf32>
    %20 = vector.extract_strided_slice %14 {offsets = [4, 0], sizes = [4, 2], strides = [1, 1]} : vector<8x2xf32> to vector<4x2xf32>
    %21 = vector.broadcast %15 : vector<1x2xf32> to vector<4x2xf32>
    %22 = arith.mulf %18, %21 : vector<4x2xf32>
    %23 = vector.broadcast %16 : vector<1x2xf32> to vector<4x2xf32>
    %24 = arith.mulf %20, %23 : vector<4x2xf32>
    %25 = arith.subf %22, %24 : vector<4x2xf32>
    %26 = vector.broadcast %16 : vector<1x2xf32> to vector<4x2xf32>
    %27 = arith.mulf %18, %26 : vector<4x2xf32>
    %28 = vector.broadcast %15 : vector<1x2xf32> to vector<4x2xf32>
    %29 = arith.mulf %20, %28 : vector<4x2xf32>
    %30 = arith.addf %27, %29 : vector<4x2xf32>
    %31 = arith.addf %17, %25 : vector<4x2xf32>
    %32 = arith.subf %17, %25 : vector<4x2xf32>
    %33 = arith.addf %19, %30 : vector<4x2xf32>
    %34 = arith.subf %19, %30 : vector<4x2xf32>
    %35 = tpu.concatenate %31, %32 in 1 : vector<4x2xf32>, vector<4x2xf32> -> vector<4x4xf32>
    %36 = tpu.concatenate %33, %34 in 1 : vector<4x2xf32>, vector<4x2xf32> -> vector<4x4xf32>
    %c0_8 = arith.constant 0 : index
    %c3 = arith.constant 3 : index
    %37 = vector.load %arg1[%c0_8, %c3] : memref<2x16xf32, #tpu.memory_space<vmem>>, vector<1x4xf32>
    %c1_9 = arith.constant 1 : index
    %c3_10 = arith.constant 3 : index
    %38 = vector.load %arg1[%c1_9, %c3_10] : memref<2x16xf32, #tpu.memory_space<vmem>>, vector<1x4xf32>
    %39 = vector.extract_strided_slice %35 {offsets = [0, 0], sizes = [2, 4], strides = [1, 1]} : vector<4x4xf32> to vector<2x4xf32>
    %40 = vector.extract_strided_slice %35 {offsets = [2, 0], sizes = [2, 4], strides = [1, 1]} : vector<4x4xf32> to vector<2x4xf32>
    %41 = vector.extract_strided_slice %36 {offsets = [0, 0], sizes = [2, 4], strides = [1, 1]} : vector<4x4xf32> to vector<2x4xf32>
    %42 = vector.extract_strided_slice %36 {offsets = [2, 0], sizes = [2, 4], strides = [1, 1]} : vector<4x4xf32> to vector<2x4xf32>
    %43 = vector.broadcast %37 : vector<1x4xf32> to vector<2x4xf32>
    %44 = arith.mulf %40, %43 : vector<2x4xf32>
    %45 = vector.broadcast %38 : vector<1x4xf32> to vector<2x4xf32>
    %46 = arith.mulf %42, %45 : vector<2x4xf32>
    %47 = arith.subf %44, %46 : vector<2x4xf32>
    %48 = vector.broadcast %38 : vector<1x4xf32> to vector<2x4xf32>
    %49 = arith.mulf %40, %48 : vector<2x4xf32>
    %50 = vector.broadcast %37 : vector<1x4xf32> to vector<2x4xf32>
    %51 = arith.mulf %42, %50 : vector<2x4xf32>
    %52 = arith.addf %49, %51 : vector<2x4xf32>
    %53 = arith.addf %39, %47 : vector<2x4xf32>
    %54 = arith.subf %39, %47 : vector<2x4xf32>
    %55 = arith.addf %41, %52 : vector<2x4xf32>
    %56 = arith.subf %41, %52 : vector<2x4xf32>
    %57 = tpu.concatenate %53, %54 in 1 : vector<2x4xf32>, vector<2x4xf32> -> vector<2x8xf32>
    %58 = tpu.concatenate %55, %56 in 1 : vector<2x4xf32>, vector<2x4xf32> -> vector<2x8xf32>
    %c0_11 = arith.constant 0 : index
    %c7 = arith.constant 7 : index
    %59 = vector.load %arg1[%c0_11, %c7] : memref<2x16xf32, #tpu.memory_space<vmem>>, vector<1x8xf32>
    %c1_12 = arith.constant 1 : index
    %c7_13 = arith.constant 7 : index
    %60 = vector.load %arg1[%c1_12, %c7_13] : memref<2x16xf32, #tpu.memory_space<vmem>>, vector<1x8xf32>
    %61 = vector.extract_strided_slice %57 {offsets = [0, 0], sizes = [1, 8], strides = [1, 1]} : vector<2x8xf32> to vector<1x8xf32>
    %62 = vector.extract_strided_slice %57 {offsets = [1, 0], sizes = [1, 8], strides = [1, 1]} : vector<2x8xf32> to vector<1x8xf32>
    %63 = vector.extract_strided_slice %58 {offsets = [0, 0], sizes = [1, 8], strides = [1, 1]} : vector<2x8xf32> to vector<1x8xf32>
    %64 = vector.extract_strided_slice %58 {offsets = [1, 0], sizes = [1, 8], strides = [1, 1]} : vector<2x8xf32> to vector<1x8xf32>
    %65 = arith.mulf %62, %59 : vector<1x8xf32>
    %66 = arith.mulf %64, %60 : vector<1x8xf32>
    %67 = arith.subf %65, %66 : vector<1x8xf32>
    %68 = arith.mulf %62, %60 : vector<1x8xf32>
    %69 = arith.mulf %64, %59 : vector<1x8xf32>
    %70 = arith.addf %68, %69 : vector<1x8xf32>
    %71 = arith.addf %61, %67 : vector<1x8xf32>
    %72 = arith.subf %61, %67 : vector<1x8xf32>
    %73 = arith.addf %63, %70 : vector<1x8xf32>
    %74 = arith.subf %63, %70 : vector<1x8xf32>
    %75 = tpu.concatenate %71, %72 in 1 : vector<1x8xf32>, vector<1x8xf32> -> vector<1x16xf32>
    %76 = tpu.concatenate %73, %74 in 1 : vector<1x8xf32>, vector<1x8xf32> -> vector<1x16xf32>
    %c0_14 = arith.constant 0 : index
    %c0_15 = arith.constant 0 : index
    %77 = vector.load %arg2[%c0_14, %c0_15] : memref<2x16xf32, #tpu.memory_space<vmem>>, vector<1x16xf32>
    tpu.vector_store %arg2[%c0_14, %c0_15], %75 {strides = array<i32>} : memref<2x16xf32, #tpu.memory_space<vmem>>, vector<1x16xf32>,
    %c1_16 = arith.constant 1 : index
    %c0_17 = arith.constant 0 : index
    %78 = vector.load %arg2[%c1_16, %c0_17] : memref<2x16xf32, #tpu.memory_space<vmem>>, vector<1x16xf32>
    tpu.vector_store %arg2[%c1_16, %c0_17], %76 {strides = array<i32>} : memref<2x16xf32, #tpu.memory_space<vmem>>, vector<1x16xf32>,
    return
  }
}

</mosaic_0001>

<bundles_post_ra>
// kernel: fft_model_forward.1
= control target key start
LH: loop header
LB: loop body
LE: loop exit
PB: predicated region body
PF: predicated region fallthrough
CT: control target
= control target key end

     0   :  { %s194_s15 = smov 127   ;;  %s240_s0 = inlined_call_operand.vmem [shape: f32[16,1], index: 0, kind: input, shape index: {}]   ;;  %s241_s1 = inlined_call_operand.vmem [shape: f32[2,16], index: 1, kind: input, shape index: {}]   ;;  %s242_s2 = inlined_call_operand.hbm [shape: f32[2,16], index: 2, kind: output, shape index: {}]  }
   0x1   :  { %v166_v0 = vld [vmem:[%s241_s1] ss:$0 sm:$0xff]  ;;  %v13_v2 = vld [vmem:[%s240_s0 + $0x8] sm:$0xff]  ;;  %v167_v4 = vld [vmem:[%s241_s1 + $0x1] ss:$0 sm:$0xff] }
   0x2   :  { %v12_v1 = vld [vmem:[%s240_s0] sm:$0xff]  ;;  %35 = vrot.lane.b32.xlu1 %v166_v0, %s194_s15  ;;  %v17_v3 = vmul.f32 %v166_v0, %v13_v2 }
   0x3   :  { %7 = vsyncpa [#allocation3], 0  ;;  %s195_s18 = smov 1   ;;  %v19_v7 = vmul.f32 %v167_v4, %v13_v2  ;;  %s196_s19 = smov 125   ;;  %v14_v9 = vld [vmem:[%s241_s1] sm:$0x1] }
   0x4   :  { %v21_v5 = vsub.f32 %v12_v1, %v17_v3  ;;  %v20_v6 = vadd.f32 %v17_v3, %v12_v1  ;;  %v103_v10 = vrot.slane %v14_v9, 7  ;;  %s197_s21 = smov 121   ;;  %vm27_vm0 = vcmask 7168   ;;  %s198_s22 = smov 2   ;;  %v15_v47 = vld [vmem:[%s241_s1 + $0x1] sm:$0x1] }
   0x5   :  { %v22_v8 = vsub.f32 0.0, %v19_v7  ;;  %vm62_vm1 = vcmask 15360   ;;  %s199_s23 = smov 4   ;;  %v109_v48 = vrot.slane %v15_v47, 7  ;;  %vm95_vm2 = vcmask 31744   ;;  %s200_s1 = smov 8  }
   0x6   :  { %24 = vrot.lane.b32.xlu0 %v21_v5, %s195_s18  ;;  %vm132_vm3 = vcmask 64512   ;;  %s201_s26 = smov [#allocation2]   ;;  %s149_s30 = sshll.u32 %s242_s2, 4  ;;  %vm139_vm4 = vcmask 122880   ;;  %s150_s30 = int_to_ptr.hbm [resolvable:$true] %s149_s30 }
   0x7   :  { %s147_s27 = sshll.u32 %s201_s26, 4  ;;  %s148_s27 = int_to_ptr.vmem [resolvable:$true] %s147_s27 }
   0xa   :  { %40 = vrot.lane.b32.xlu1 %v167_v4, %s194_s15 }
   0xe   :  { %30 = vrot.lane.b32.xlu0 %v22_v8, %s195_s18 }
  0x12   :  { %73 = vrot.lane.b32.xlu1 %v167_v4, %s196_s19 }
  0x16   :  { %69 = vrot.lane.b32.xlu0 %v166_v0, %s196_s19 }
  0x1a   :  { %104 = vrot.lane.b32.xlu1 %v103_v10, %s197_s21 }
  0x74   :  { %v36_v11 = vpop.permute.xlu1 %35 }
  0x78   :  { %v25_v12 = vpop.permute.xlu0 %24 }
  0x79   :  { %v28_v13 = vsel %vm27_vm0, %v20_v6, %v25_v12 }
  0x7a   :  { %v38_v17 = vmul.f32 %v36_v11, %v28_v13 }
  0x7c   :  { %v41_v14 = vpop.permute.xlu1 %40 }
  0x7d   :  { %v45_v18 = vmul.f32 %v41_v14, %v28_v13 }
  0x80   :  { %v31_v15 = vpop.permute.xlu0 %30 }
  0x81   :  { %v33_v16 = vsel %vm27_vm0, %v19_v7, %v31_v15 }
  0x82   :  { %v43_v19 = vmul.f32 %v41_v14, %v33_v16  ;;  %v46_v20 = vmul.f32 %v36_v11, %v33_v16 }
  0x84   :  { %v47_v21 = vadd.f32 %v46_v20, %v45_v18  ;;  %v44_v22 = vsub.f32 %v38_v17, %v43_v19  ;;  %v74_v31 = vpop.permute.xlu1 %73 }
  0x86   :  { %v54_v23 = vrot.slane %v47_v21, 4  ;;  %v49_v24 = vrot.slane %v44_v22, 4 }
  0x88   :  { %v56_v25 = vadd.f32 %v54_v23, %v33_v16  ;;  %v52_v26 = vsub.f32 %v28_v13, %v49_v24  ;;  %v51_v27 = vadd.f32 %v49_v24, %v28_v13  ;;  %v57_v28 = vsub.f32 %v33_v16, %v54_v23  ;;  %v70_v32 = vpop.permute.xlu0 %69 }
  0x8a   :  { %59 = vrot.lane.b32.xlu2 %v52_v26, %s198_s22 }
  0x8c   :  { %v105_v51 = vpop.permute.xlu1 %104 }
  0x92   :  { %65 = vrot.lane.b32.xlu2 %v57_v28, %s198_s22 }
  0xe4   :  { %v60_v29 = vpop.permute.xlu2 %59 }
  0xe5   :  { %v63_v30 = vsel %vm62_vm1, %v51_v27, %v60_v29 }
  0xe6   :  { %v78_v35 = vmul.f32 %v74_v31, %v63_v30  ;;  %v72_v36 = vmul.f32 %v70_v32, %v63_v30 }
  0xec   :  { %v66_v33 = vpop.permute.xlu2 %65 }
  0xed   :  { %v68_v34 = vsel %vm62_vm1, %v56_v25, %v66_v33 }
  0xee   :  { %v76_v37 = vmul.f32 %v74_v31, %v68_v34  ;;  %v79_v38 = vmul.f32 %v70_v32, %v68_v34 }
  0xf0   :  { %v80_v39 = vadd.f32 %v79_v38, %v78_v35  ;;  %v77_v40 = vsub.f32 %v72_v36, %v76_v37 }
  0xf2   :  { %v87_v41 = vrot.slane %v80_v39, 2  ;;  %v82_v42 = vrot.slane %v77_v40, 2 }
  0xf4   :  { %v89_v43 = vadd.f32 %v87_v41, %v68_v34  ;;  %v90_v44 = vsub.f32 %v68_v34, %v87_v41  ;;  %v85_v45 = vsub.f32 %v63_v30, %v82_v42  ;;  %v84_v46 = vadd.f32 %v82_v42, %v63_v30 }
  0xf6   :  { %98 = vrot.lane.b32.xlu0 %v90_v44, %s199_s23  ;;  %92 = vrot.lane.b32.xlu2 %v85_v45, %s199_s23 }
  0xfe   :  { %110 = vrot.lane.b32.xlu2 %v109_v48, %s197_s21 }
 0x150   :  { %v93_v49 = vpop.permute.xlu2 %92 }
 0x151   :  { %v96_v50 = vsel %vm95_vm2, %v84_v46, %v93_v49 }
 0x152   :  { %v107_v55 = vmul.f32 %v105_v51, %v96_v50 }
 0x158   :  { %v111_v52 = vpop.permute.xlu2 %110 }
 0x159   :  { %v115_v56 = vmul.f32 %v111_v52, %v96_v50 }
 0x168   :  { %v99_v53 = vpop.permute.xlu0 %98 }
 0x169   :  { %v101_v54 = vsel %vm95_vm2, %v89_v43, %v99_v53 }
 0x16a   :  { %v113_v57 = vmul.f32 %v111_v52, %v101_v54  ;;  %v116_v58 = vmul.f32 %v105_v51, %v101_v54 }
 0x16c   :  { %v117_v59 = vadd.f32 %v116_v58, %v115_v56  ;;  %v114_v60 = vsub.f32 %v107_v55, %v113_v57 }
 0x16e   :  { %v124_v61 = vrot.slane %v117_v59, 1  ;;  %v119_v62 = vrot.slane %v114_v60, 1 }
 0x170   :  { %v126_v63 = vadd.f32 %v124_v61, %v101_v54  ;;  %v127_v0 = vsub.f32 %v101_v54, %v124_v61  ;;  %v122_v1 = vsub.f32 %v96_v50, %v119_v62  ;;  %v121_v2 = vadd.f32 %v119_v62, %v96_v50 }
 0x172   :  { %135 = vrot.lane.b32.xlu1 %v127_v0, %s200_s1  ;;  %129 = vrot.lane.b32.xlu0 %v122_v1, %s200_s1 }
 0x1e4   :  { %v136_v3 = vpop.permute.xlu1 %135  ;;  %v130_v4 = vpop.permute.xlu0 %129 }
 0x1e5   :  { %v138_v5 = vsel %vm132_vm3, %v126_v63, %v136_v3  ;;  %v133_v6 = vsel %vm132_vm3, %v121_v2, %v130_v4 }
 0x1e6   :  { %141 = vst.msk [vmem:[#allocation2 + $0x1] sm:$0x1] %vm139_vm4, %v138_v5 }
 0x1e7   :  { %140 = vst.msk [vmem:[#allocation2] sm:$0x1] %vm139_vm4, %v133_v6 }
 0x1e8   :  { %152 = dma.vmem_to_hbm [thread:$0]  %s148_s27, 32, %s150_s30, [#allocation3]  }
 0x1e9   :  { %192 = dma.done.wait [#allocation3], 32  }
 0x1ea   :  { %193 = vsyncadd [#allocation3], 4294967264 }
 0x1eb   :  { %157 = vsyncpa [#allocation3], 1 }

</bundles_post_ra>
